<compile_context>
chip_gen: v5e
topology: v5e:2x2
jax: 0.10.0
libtpu: 0.0.40
codegen_flags: <defaults>
</compile_context>

<pallas_src>
import functools

import jax
import jax.numpy as jnp
from jax.experimental import pallas as pl
from jax.experimental.pallas import tpu as pltpu


def mlp_kernel(x_ref, w1_ref, b1_ref, w2_ref, b2_ref, w3_ref, b3_ref, o_ref):
    # Cast the activation stream to bf16 in-kernel (hidden under the DMA).
    x = x_ref[...].astype(jnp.bfloat16)

    # Layer 1: bf16 MXU, f32 accumulate, f32 bias + ReLU.
    h1 = jnp.dot(x, w1_ref[...], preferred_element_type=jnp.float32)
    h1 = jnp.maximum(h1 + b1_ref[...], 0.0)

    # Layer 2
    h2 = jnp.dot(h1.astype(jnp.bfloat16), w2_ref[...],
                 preferred_element_type=jnp.float32)
    h2 = jnp.maximum(h2 + b2_ref[...], 0.0)

    # Layer 3 (output block last dim == full action_dim -> no padding, the
    # lane-masked stores cost the same number of vst's).
    out = jnp.dot(h2.astype(jnp.bfloat16), w3_ref[...],
                  preferred_element_type=jnp.float32)
    o_ref[...] = (out + b3_ref[...]).astype(o_ref.dtype)


def prepare_params(w1, b1, w2, b2, w3, b3):
    """One-time parameter preparation (call once, outside the inference loop):
    bf16 weights for the MXU, f32 biases kept as (1, out) row vectors."""
    return (w1.astype(jnp.bfloat16), b1.astype(jnp.float32),
            w2.astype(jnp.bfloat16), b2.astype(jnp.float32),
            w3.astype(jnp.bfloat16), b3.astype(jnp.float32))


def _pick_batch_tile(B, block_b):
    if B <= 8:
        return B                      # single block == full array dim (legal)
    half = -(-B // 2)                 # ceil(B/2): ensure >= 2 grid steps (v7x TCs)
    return max(8, min(block_b, ((half + 7) // 8) * 8))


@functools.partial(jax.jit, static_argnames=("block_b",))
def mlp_forward(x, w1_bf, b1, w2_bf, b2, w3_bf, b3, *, block_b=2048):
    """x: (B, S) f32.  Weights (in, out) bf16 (see prepare_params), biases (1, out) f32."""
    B, S = x.shape
    H1 = w1_bf.shape[1]
    H2 = w2_bf.shape[1]
    A = w3_bf.shape[1]

    tb = _pick_batch_tile(B, block_b)
    n_tiles = pl.cdiv(B, tb)          # ragged final block handled by Pallas masking

    # Weights/biases: whole-array blocks, same block index every grid step ->
    # pinned in VMEM across the batch loop (DMA'd once).
    resident = lambda a: pl.BlockSpec(a.shape, lambda i: (0,) * a.ndim)

    flops = 2 * B * (S * H1 + H1 * H2 + H2 * A)
    bytes_accessed = (B * S * 4                                   # x (f32 in)
                      + 2 * (S * H1 + H1 * H2 + H2 * A)           # bf16 weights
                      + 4 * (H1 + H2 + A)                         # f32 biases
                      + B * A * 4)                                # f32 out

    out = pl.pallas_call(
        mlp_kernel,
        out_shape=jax.ShapeDtypeStruct((B, A), jnp.float32),
        grid=(n_tiles,),
        in_specs=[
            pl.BlockSpec((tb, S), lambda i: (i, 0)),              # x: batch-tiled
            resident(w1_bf), resident(b1),
            resident(w2_bf), resident(b2),
            resident(w3_bf), resident(b3),
        ],
        out_specs=pl.BlockSpec((tb, A), lambda i: (i, 0)),
        compiler_params=pltpu.CompilerParams(
            dimension_semantics=("parallel",)),                   # v7x: 2 TCs
        cost_estimate=pl.CostEstimate(flops=flops, transcendentals=0,
                                      bytes_accessed=bytes_accessed),
    )(x, w1_bf, b1, w2_bf, b2, w3_bf, b3)
    return out


def xavier_normal(key, fan_in, fan_out):
    # Matches nn.init.xavier_normal_ (gain=1): std = sqrt(2/(fan_in+fan_out)).
    std = jnp.sqrt(2.0 / (fan_in + fan_out))
    # Stored as (in, out): transpose of PyTorch's (out, in) weight layout.
    return std * jax.random.normal(key, (fan_in, fan_out), dtype=jnp.float32)


def linear_bias(key, fan_in, fan_out):
    # nn.Linear default bias init: U(-1/sqrt(fan_in), 1/sqrt(fan_in)).
    bound = 1.0 / jnp.sqrt(jnp.float32(fan_in))
    return jax.random.uniform(key, (1, fan_out), dtype=jnp.float32,
                              minval=-bound, maxval=bound)


if __name__ == "__main__":
    state_dim, action_dim, batch = 32, 8, 128

    key = jax.random.PRNGKey(0)
    kx, k1, k2, k3, kb1, kb2, kb3 = jax.random.split(key, 7)

    x = jax.random.normal(kx, (batch, state_dim), dtype=jnp.float32)

    w1 = xavier_normal(k1, state_dim, 64)
    b1 = linear_bias(kb1, state_dim, 64)
    w2 = xavier_normal(k2, 64, 64)
    b2 = linear_bias(kb2, 64, 64)
    w3 = xavier_normal(k3, 64, action_dim)
    b3 = linear_bias(kb3, 64, action_dim)

    # One-time weight prep (bf16 casts) hoisted out of the per-call hot path.
    params = prepare_params(w1, b1, w2, b2, w3, b3)

    # batch=128 -> tb=64, 2 grid steps (exercises the batch-tiled grid + megacore path).
    out = mlp_forward(x, *params)
    jax.block_until_ready(out)
    assert out.shape == (batch, action_dim)
    assert out.dtype == jnp.float32

    # Reference 1: mirror the kernel's bf16 operand casts exactly (tight check
    # of kernel logic; only MXU accumulation order differs).
    f32 = jnp.float32
    h = jnp.maximum(x.astype(jnp.bfloat16).astype(f32)
                    @ w1.astype(jnp.bfloat16).astype(f32) + b1, 0.0)
    h = jnp.maximum(h.astype(jnp.bfloat16).astype(f32)
                    @ w2.astype(jnp.bfloat16).astype(f32) + b2, 0.0)
    ref_bf = (h.astype(jnp.bfloat16).astype(f32)
              @ w3.astype(jnp.bfloat16).astype(f32) + b3)
    assert jnp.allclose(out, ref_bf, atol=1e-3, rtol=1e-3)

    # Reference 2: pure f32 module semantics (loose check; bf16 rounding only).
    ref = jnp.maximum(x @ w1 + b1, 0.0)
    ref = jnp.maximum(ref @ w2 + b2, 0.0)
    ref = ref @ w3 + b3
    assert jnp.allclose(out, ref, atol=5e-2, rtol=5e-2)

    print("KERNEL_OK")
</pallas_src>

<mosaic_0001>
module attributes {stable_mosaic.version = 11 : i64} {
  func.func @mlp_kernel(%arg0: i32, %arg1: memref<64x32xf32, #tpu.memory_space<vmem>>, %arg2: memref<32x64xbf16, #tpu.memory_space<vmem>>, %arg3: memref<1x64xf32, #tpu.memory_space<vmem>>, %arg4: memref<64x64xbf16, #tpu.memory_space<vmem>>, %arg5: memref<1x64xf32, #tpu.memory_space<vmem>>, %arg6: memref<64x8xbf16, #tpu.memory_space<vmem>>, %arg7: memref<1x8xf32, #tpu.memory_space<vmem>>, %arg8: memref<64x8xf32, #tpu.memory_space<vmem>>) attributes {dimension_semantics = [#tpu.dimension_semantics<parallel>], iteration_bounds = array<i64: 2>, scalar_prefetch = 0 : i64, scratch_operands = 0 : i64, tpu.core_type = #tpu.core_type<tc>, window_params = [{transform_indices = @transform_0, window_bounds = array<i64: 64, 32>}, {pipeline_mode = #tpu.pipeline_mode<synchronous>, transform_indices = @transform_1, window_bounds = array<i64: 32, 64>}, {pipeline_mode = #tpu.pipeline_mode<synchronous>, transform_indices = @transform_2, window_bounds = array<i64: 1, 64>}, {pipeline_mode = #tpu.pipeline_mode<synchronous>, transform_indices = @transform_3, window_bounds = array<i64: 64, 64>}, {pipeline_mode = #tpu.pipeline_mode<synchronous>, transform_indices = @transform_4, window_bounds = array<i64: 1, 64>}, {pipeline_mode = #tpu.pipeline_mode<synchronous>, transform_indices = @transform_5, window_bounds = array<i64: 64, 8>}, {pipeline_mode = #tpu.pipeline_mode<synchronous>, transform_indices = @transform_6, window_bounds = array<i64: 1, 8>}, {transform_indices = @transform_7, window_bounds = array<i64: 64, 8>}]} {
    %c0 = arith.constant 0 : index
    %c0_0 = arith.constant 0 : index
    %0 = vector.load %arg1[%c0, %c0_0] : memref<64x32xf32, #tpu.memory_space<vmem>>, vector<64x32xf32>
    %1 = arith.truncf %0 : vector<64x32xf32> to vector<64x32xbf16>
    %c0_1 = arith.constant 0 : index
    %c0_2 = arith.constant 0 : index
    %2 = vector.load %arg2[%c0_1, %c0_2] : memref<32x64xbf16, #tpu.memory_space<vmem>>, vector<32x64xbf16>
    %cst = arith.constant dense<0.000000e+00> : vector<64x64xf32>
    %3 = tpu.matmul %1, %2, %cst {dimension_numbers = #tpu.dot_dimension_numbers<[1], [0], [0], [1], [0, 0, 1, 1], [], []>} : vector<64x32xbf16>, vector<32x64xbf16>, vector<64x64xf32> -> vector<64x64xf32>
    %c0_3 = arith.constant 0 : index
    %c0_4 = arith.constant 0 : index
    %4 = vector.load %arg3[%c0_3, %c0_4] : memref<1x64xf32, #tpu.memory_space<vmem>>, vector<1x64xf32>
    %5 = vector.broadcast %4 : vector<1x64xf32> to vector<64x64xf32>
    %6 = arith.addf %3, %5 : vector<64x64xf32>
    %cst_5 = arith.constant 0.000000e+00 : f32
    %7 = vector.broadcast %cst_5 : f32 to vector<64x64xf32>
    %8 = arith.maximumf %6, %7 : vector<64x64xf32>
    %9 = arith.truncf %8 : vector<64x64xf32> to vector<64x64xbf16>
    %c0_6 = arith.constant 0 : index
    %c0_7 = arith.constant 0 : index
    %10 = vector.load %arg4[%c0_6, %c0_7] : memref<64x64xbf16, #tpu.memory_space<vmem>>, vector<64x64xbf16>
    %cst_8 = arith.constant dense<0.000000e+00> : vector<64x64xf32>
    %11 = tpu.matmul %9, %10, %cst_8 {dimension_numbers = #tpu.dot_dimension_numbers<[1], [0], [0], [1], [0, 0, 1, 1], [], []>} : vector<64x64xbf16>, vector<64x64xbf16>, vector<64x64xf32> -> vector<64x64xf32>
    %c0_9 = arith.constant 0 : index
    %c0_10 = arith.constant 0 : index
    %12 = vector.load %arg5[%c0_9, %c0_10] : memref<1x64xf32, #tpu.memory_space<vmem>>, vector<1x64xf32>
    %13 = vector.broadcast %12 : vector<1x64xf32> to vector<64x64xf32>
    %14 = arith.addf %11, %13 : vector<64x64xf32>
    %cst_11 = arith.constant 0.000000e+00 : f32
    %15 = vector.broadcast %cst_11 : f32 to vector<64x64xf32>
    %16 = arith.maximumf %14, %15 : vector<64x64xf32>
    %17 = arith.truncf %16 : vector<64x64xf32> to vector<64x64xbf16>
    %c0_12 = arith.constant 0 : index
    %c0_13 = arith.constant 0 : index
    %18 = vector.load %arg6[%c0_12, %c0_13] : memref<64x8xbf16, #tpu.memory_space<vmem>>, vector<64x8xbf16>
    %cst_14 = arith.constant dense<0.000000e+00> : vector<64x8xf32>
    %19 = tpu.matmul %17, %18, %cst_14 {dimension_numbers = #tpu.dot_dimension_numbers<[1], [0], [0], [1], [0, 0, 1, 1], [], []>} : vector<64x64xbf16>, vector<64x8xbf16>, vector<64x8xf32> -> vector<64x8xf32>
    %c0_15 = arith.constant 0 : index
    %c0_16 = arith.constant 0 : index
    %20 = vector.load %arg7[%c0_15, %c0_16] : memref<1x8xf32, #tpu.memory_space<vmem>>, vector<1x8xf32>
    %21 = vector.broadcast %20 : vector<1x8xf32> to vector<64x8xf32>
    %22 = arith.addf %19, %21 : vector<64x8xf32>
    %c0_17 = arith.constant 0 : index
    %c0_18 = arith.constant 0 : index
    %23 = vector.load %arg8[%c0_17, %c0_18] : memref<64x8xf32, #tpu.memory_space<vmem>>, vector<64x8xf32>
    tpu.vector_store %arg8[%c0_17, %c0_18], %22 {strides = array<i32>} : memref<64x8xf32, #tpu.memory_space<vmem>>, vector<64x8xf32>,
    return
  }
  func.func @transform_0(%arg0: i32) -> (i32, i32) {
    %c0_i32 = arith.constant 0 : i32
    %c0_i32_0 = arith.constant 0 : i32
    return %arg0, %c0_i32 : i32, i32
  }
  func.func @transform_1(%arg0: i32) -> (i32, i32) {
    %c0_i32 = arith.constant 0 : i32
    %c0_i32_0 = arith.constant 0 : i32
    %c0_i32_1 = arith.constant 0 : i32
    return %c0_i32, %c0_i32_0 : i32, i32
  }
  func.func @transform_2(%arg0: i32) -> (i32, i32) {
    %c0_i32 = arith.constant 0 : i32
    %c0_i32_0 = arith.constant 0 : i32
    %c0_i32_1 = arith.constant 0 : i32
    return %c0_i32, %c0_i32_0 : i32, i32
  }
  func.func @transform_3(%arg0: i32) -> (i32, i32) {
    %c0_i32 = arith.constant 0 : i32
    %c0_i32_0 = arith.constant 0 : i32
    %c0_i32_1 = arith.constant 0 : i32
    return %c0_i32, %c0_i32_0 : i32, i32
  }
  func.func @transform_4(%arg0: i32) -> (i32, i32) {
    %c0_i32 = arith.constant 0 : i32
    %c0_i32_0 = arith.constant 0 : i32
    %c0_i32_1 = arith.constant 0 : i32
    return %c0_i32, %c0_i32_0 : i32, i32
  }
  func.func @transform_5(%arg0: i32) -> (i32, i32) {
    %c0_i32 = arith.constant 0 : i32
    %c0_i32_0 = arith.constant 0 : i32
    %c0_i32_1 = arith.constant 0 : i32
    return %c0_i32, %c0_i32_0 : i32, i32
  }
  func.func @transform_6(%arg0: i32) -> (i32, i32) {
    %c0_i32 = arith.constant 0 : i32
    %c0_i32_0 = arith.constant 0 : i32
    %c0_i32_1 = arith.constant 0 : i32
    return %c0_i32, %c0_i32_0 : i32, i32
  }
  func.func @transform_7(%arg0: i32) -> (i32, i32) {
    %c0_i32 = arith.constant 0 : i32
    %c0_i32_0 = arith.constant 0 : i32
    return %arg0, %c0_i32 : i32, i32
  }
}

</mosaic_0001>

<bundles_post_ra>
// kernel: mlp_forward.1
= control target key start
LH: loop header
LB: loop body
LE: loop exit
PB: predicated region body
PF: predicated region fallthrough
CT: control target
= control target key end

     0   :  { %s741_s24 = smov 0   ;;  %s820_s0 = inlined_call_operand.vmem [shape: f32[128,32], index: 0, kind: input, shape index: {}]   ;;  %s821_s1 = inlined_call_operand.vmem [shape: bf16[32,64], index: 1, kind: input, shape index: {}]   ;;  %s822_s2 = inlined_call_operand.vmem [shape: f32[1,64], index: 2, kind: input, shape index: {}]   ;;  %s823_s3 = inlined_call_operand.vmem [shape: bf16[64,64], index: 3, kind: input, shape index: {}]   ;;  %s824_s4 = inlined_call_operand.vmem [shape: f32[1,64], index: 4, kind: input, shape index: {}]   ;;  %s825_s5 = inlined_call_operand.vmem [shape: bf16[64,8], index: 5, kind: input, shape index: {}]   ;;  %s826_s6 = inlined_call_operand.vmem [shape: f32[1,8], index: 6, kind: input, shape index: {}]   ;;  %s827_s7 = inlined_call_operand.vmem [shape: f32[128,8], index: 7, kind: output, shape index: {}]  }
   0x1 LB: > { %s601_s25 = sadd.s32 4294967295, %s699_s24   ;;  %p605_p0 = scmp.ge.s32.totalorder %s699_s24, 1  ;;  %s699_s24 = sphi %s741_s24, %s17_s24  }
   0x2   : > { %p238_p1 = scmp.lt.s32.totalorder %s699_s24, 3 }
   0x4   : > { %p239_p2 = pnand %p605_p0, %p238_p1 }
   0x5   : > { %s606_s28 = sshll.u32 (!%p239_p2), %s601_s25, 3 }
   0x6   : > { %242 = sbr.rel (%p239_p2) target bundleno = 496 (0x1f0), region = 48  ;;  %p271_p3 = scmp.lt.s32.totalorder (!%p239_p2), %s606_s28, 15 }
   0xb   : > { %v665_v0 = vld [vmem:[%s821_s1 + $0x8] sm:$0xff]  ;;  %v664_v1 = vld [vmem:[%s821_s1] sm:$0xff]  ;;  %s829_s28 = smov (!%p271_p3, %s606_s28), 15  ;;  %vm315_vm0 = vcmask 261120   ;;  %v669_v14 = vld [vmem:[%s823_s3 + $0x18] sm:$0xff]  ;;  %vm405_vm1 = vcmask 523264  }
   0xc   : > { %334 = vmatpush.bf16.msra.mxu0 %v665_v0  ;;  %s607_s8 = sshll.u32 %s829_s28, 3  ;;  %422 = vmatpush.bf16.msra.mxu1 %v669_v14  ;;  %v668_v15 = vld [vmem:[%s823_s3 + $0x10] sm:$0xff]  ;;  %v667_v16 = vld [vmem:[%s823_s3 + $0x8] sm:$0xff]  ;;  %v666_v17 = vld [vmem:[%s823_s3] sm:$0xff]  ;;  %vm536_vm2 = vcmask 64512  }
   0xd   : > { %s274_s11 = scalar_lea.vmem %s820_s0, %s607_s8  ;;  %674 = vmatpush.bf16.msra.mxu3 %v669_v14  ;;  %v690_v19 = vld [vmem:[%s822_s2] ss:$0 sm:$0xff]  ;;  %v673_v47 = vld [vmem:[%s825_s5 + $0x18] sm:$0xff]  ;;  %v672_v48 = vld [vmem:[%s825_s5 + $0x10] sm:$0xff]  ;;  %s280_s16 = scalar_lea.vmem %s827_s7, %s607_s8 }
   0xe   : > { %v283_v2 = vld [vmem:[%s274_s11] sm:$0xff]  ;;  %v284_v3 = vld [vmem:[%s274_s11 + $0x8] sm:$0xff]  ;;  %v285_v5 = vld [vmem:[%s274_s11 + $0x10] sm:$0xff]  ;;  %678 = vmatpush.bf16.msra.mxu2 %v673_v47 }
   0xf   : > { %v291_v4 = vpack.c.bf16 %v284_v3, %v283_v2  ;;  %v286_v6 = vld [vmem:[%s274_s11 + $0x18] sm:$0xff]  ;;  %v287_v8 = vld [vmem:[%s274_s11 + $0x20] sm:$0xff]  ;;  %v288_v9 = vld [vmem:[%s274_s11 + $0x28] sm:$0xff] }
  0x10   : > { %335 = vmatpush.bf16.msra.mxu0 %v664_v1  ;;  %v292_v7 = vpack.c.bf16 %v286_v6, %v285_v5  ;;  %v293_v10 = vpack.c.bf16 %v288_v9, %v287_v8  ;;  %v289_v11 = vld [vmem:[%s274_s11 + $0x30] sm:$0xff]  ;;  %v290_v12 = vld [vmem:[%s274_s11 + $0x38] sm:$0xff]  ;;  %423 = vmatpush.bf16.msra.mxu1 %v668_v15  ;;  %v671_v49 = vld [vmem:[%s825_s5 + $0x8] sm:$0xff] }
  0x11   : > { %v294_v13 = vpack.c.bf16 %v290_v12, %v289_v11  ;;  %675 = vmatpush.bf16.msra.mxu3 %v668_v15  ;;  %v670_v50 = vld [vmem:[%s825_s5] sm:$0xff] }
  0x12   : > { %679 = vmatpush.bf16.msra.mxu2 %v672_v48  ;;  %v691_v52 = vld [vmem:[%s824_s4] ss:$0 sm:$0xff] }
  0x13   : > { %618 = vmatmul.msk.bf16.vlgmr.msra.gmra.mxu0 %vm315_vm0, %v291_v4 }
  0x14   : > { %424 = vmatpush.bf16.msra.mxu1 %v667_v16 }
  0x15   : > { %676 = vmatpush.bf16.msra.mxu3 %v667_v16  ;;  %v692_v16 = vld [vmem:[%s826_s6] ss:$0 sm:$0xff] }
  0x16   : > { %680 = vmatpush.bf16.msra.mxu2 %v671_v49 }
  0x18   : > { %425 = vmatpush.bf16.msra.mxu1 %v666_v17 }
  0x19   : > { %677 = vmatpush.bf16.msra.mxu3 %v666_v17 }
  0x1a   : > { %681 = vmatpush.bf16.msra.mxu2 %v670_v50 }
  0x1c   : > { %511 = vmatpush.bf16.msrb.mxu1 %v673_v47 }
  0x20   : > { %512 = vmatpush.bf16.msrb.mxu1 %v672_v48 }
  0x23   : > { %619 = vmatmul.msk.bf16.gmra.mxu0 %vm315_vm0, %v292_v7 }
  0x24   : > { %513 = vmatpush.bf16.msrb.mxu1 %v671_v49 }
  0x28   : > { %514 = vmatpush.bf16.msrb.mxu1 %v670_v50 }
  0x33   : > { %620 = vmatmul.msk.bf16.gmra.mxu0 %vm315_vm0, %v293_v10 }
  0x43   : > { %621 = vmatmul.msk.bf16.gmra.mxu0 %vm315_vm0, %v294_v13 }
  0x90   : > { %v337_v18 = vpop.f32.mrf.mxu0 }
  0x91   : > { %v338_v20 = vadd.f32 %v690_v19, %v337_v18 }
  0x93   : > { %v357_v23 = vmax.f32 %v338_v20, 0.0 }
  0x98   : > { %v339_v21 = vpop.f32.mrf.mxu0 }
  0x99   : > { %v340_v22 = vadd.f32 %v690_v19, %v339_v21 }
  0x9b   : > { %v358_v24 = vmax.f32 %v340_v22, 0.0 }
  0x9d   : > { %v365_v25 = vpack.c.bf16 %v358_v24, %v357_v23 }
  0x9f   : > { %638 = vmatmul.msk.bf16.vlgmr.msra.gmra.mxu1 %vm405_vm1, %v365_v25 }
  0xa0   : > { %v342_v26 = vpop.f32.mrf.mxu0 }
  0xa1   : > { %v343_v27 = vadd.f32 %v690_v19, %v342_v26 }
  0xa3   : > { %v359_v30 = vmax.f32 %v343_v27, 0.0 }
  0xa8   : > { %v344_v28 = vpop.f32.mrf.mxu0 }
  0xa9   : > { %v345_v29 = vadd.f32 %v690_v19, %v344_v28 }
  0xab   : > { %v360_v31 = vmax.f32 %v345_v29, 0.0 }
  0xad   : > { %v366_v32 = vpack.c.bf16 %v360_v31, %v359_v30 }
  0xaf   : > { %639 = vmatmul.msk.bf16.vlgmr.msra.gmra.mxu3 %vm405_vm1, %v366_v32 }
  0xb0   : > { %v347_v33 = vpop.f32.mrf.mxu0 }
  0xb1   : > { %v348_v34 = vadd.f32 %v690_v19, %v347_v33 }
  0xb3   : > { %v361_v37 = vmax.f32 %v348_v34, 0.0 }
  0xb8   : > { %v349_v35 = vpop.f32.mrf.mxu0 }
  0xb9   : > { %v350_v36 = vadd.f32 %v690_v19, %v349_v35 }
  0xbb   : > { %v362_v38 = vmax.f32 %v350_v36, 0.0 }
  0xbd   : > { %v367_v39 = vpack.c.bf16 %v362_v38, %v361_v37 }
  0xbf   : > { %640 = vmatmul.msk.bf16.gmra.mxu3 %vm405_vm1, %v367_v39 }
  0xc0   : > { %v352_v40 = vpop.f32.mrf.mxu0 }
  0xc1   : > { %v353_v41 = vadd.f32 %v690_v19, %v352_v40 }
  0xc3   : > { %v363_v44 = vmax.f32 %v353_v41, 0.0 }
  0xc8   : > { %v354_v42 = vpop.f32.mrf.mxu0 }
  0xc9   : > { %v355_v43 = vadd.f32 %v690_v19, %v354_v42 }
  0xcb   : > { %v364_v45 = vmax.f32 %v355_v43, 0.0 }
  0xcd   : > { %v368_v46 = vpack.c.bf16 %v364_v45, %v363_v44 }
  0xcf   : > { %641 = vmatmul.msk.bf16.gmra.mxu3 %vm405_vm1, %v368_v46 }
 0x11c   : > { %v427_v51 = vpop.f32.mrf.mxu1 }
 0x11d   : > { %v428_v53 = vadd.f32 %v691_v52, %v427_v51 }
 0x11f   : > { %v447_v56 = vmax.f32 %v428_v53, 0.0 }
 0x124   : > { %v429_v54 = vpop.f32.mrf.mxu1 }
 0x125   : > { %v430_v55 = vadd.f32 %v691_v52, %v429_v54 }
 0x127   : > { %v448_v57 = vmax.f32 %v430_v55, 0.0 }
 0x129   : > { %v455_v58 = vpack.c.bf16 %v448_v57, %v447_v56 }
 0x12b   : > { %658 = vmatmul.msk.bf16.vlgmr.msrb.gmra.mxu1 %vm405_vm1, %v455_v58 }
 0x132   : > { %v432_v59 = vpop.f32.mrf.mxu3 }
 0x133   : > { %v433_v60 = vadd.f32 %v691_v52, %v432_v59 }
 0x135   : > { %v449_v63 = vmax.f32 %v433_v60, 0.0 }
 0x13a   : > { %v434_v61 = vpop.f32.mrf.mxu3 }
 0x13b   : > { %v435_v62 = vadd.f32 %v691_v52, %v434_v61 }
 0x13d   : > { %v450_v0 = vmax.f32 %v435_v62, 0.0 }
 0x13f   : > { %v456_v1 = vpack.c.bf16 %v450_v0, %v449_v63 }
 0x141   : > { %659 = vmatmul.msk.bf16.vlgmr.msra.gmra.mxu2 %vm405_vm1, %v456_v1 }
 0x142   : > { %v437_v2 = vpop.f32.mrf.mxu3 }
 0x143   : > { %v438_v3 = vadd.f32 %v691_v52, %v437_v2 }
 0x145   : > { %v451_v6 = vmax.f32 %v438_v3, 0.0 }
 0x14a   : > { %v439_v4 = vpop.f32.mrf.mxu3 }
 0x14b   : > { %v440_v5 = vadd.f32 %v691_v52, %v439_v4 }
 0x14d   : > { %v452_v7 = vmax.f32 %v440_v5, 0.0 }
 0x14f   : > { %v457_v8 = vpack.c.bf16 %v452_v7, %v451_v6 }
 0x151   : > { %660 = vmatmul.msk.bf16.gmra.mxu2 %vm405_vm1, %v457_v8 }
 0x152   : > { %v442_v9 = vpop.f32.mrf.mxu3 }
 0x153   : > { %v443_v10 = vadd.f32 %v691_v52, %v442_v9 }
 0x155   : > { %v453_v13 = vmax.f32 %v443_v10, 0.0 }
 0x15a   : > { %v444_v11 = vpop.f32.mrf.mxu3 }
 0x15b   : > { %v445_v12 = vadd.f32 %v691_v52, %v444_v11 }
 0x15d   : > { %v454_v14 = vmax.f32 %v445_v12, 0.0 }
 0x15f   : > { %v458_v15 = vpack.c.bf16 %v454_v14, %v453_v13 }
 0x161   : > { %661 = vmatmul.msk.bf16.gmra.mxu2 %vm405_vm1, %v458_v15 }
 0x1a8   : > { %v516_v17 = vpop.f32.mrf.mxu1 }
 0x1a9   : > { %v517_v18 = vadd.f32 %v692_v16, %v516_v17 }
 0x1ab   : > { %537 = vst.msk [vmem:[%s280_s16] sm:$0xff] %vm536_vm2, %v517_v18 }
 0x1b0   : > { %v518_v19 = vpop.f32.mrf.mxu1 }
 0x1b1   : > { %v519_v20 = vadd.f32 %v692_v16, %v518_v19 }
 0x1b3   : > { %538 = vst.msk [vmem:[%s280_s16 + $0x8] sm:$0xff] %vm536_vm2, %v519_v20 }
 0x1c4   : > { %v521_v21 = vpop.f32.mrf.mxu2 }
 0x1c5   : > { %v522_v22 = vadd.f32 %v692_v16, %v521_v21 }
 0x1c7   : > { %539 = vst.msk [vmem:[%s280_s16 + $0x10] sm:$0xff] %vm536_vm2, %v522_v22 }
 0x1cc   : > { %v523_v23 = vpop.f32.mrf.mxu2 }
 0x1cd   : > { %v524_v24 = vadd.f32 %v692_v16, %v523_v23 }
 0x1cf   : > { %540 = vst.msk [vmem:[%s280_s16 + $0x18] sm:$0xff] %vm536_vm2, %v524_v24 }
 0x1d4   : > { %v526_v25 = vpop.f32.mrf.mxu2 }
 0x1d5   : > { %v527_v26 = vadd.f32 %v692_v16, %v526_v25 }
 0x1d7   : > { %541 = vst.msk [vmem:[%s280_s16 + $0x20] sm:$0xff] %vm536_vm2, %v527_v26 }
 0x1dc   : > { %v528_v27 = vpop.f32.mrf.mxu2 }
 0x1dd   : > { %v529_v28 = vadd.f32 %v692_v16, %v528_v27 }
 0x1df   : > { %542 = vst.msk [vmem:[%s280_s16 + $0x28] sm:$0xff] %vm536_vm2, %v529_v28 }
 0x1e4   : > { %v531_v29 = vpop.f32.mrf.mxu2 }
 0x1e5   : > { %v532_v30 = vadd.f32 %v692_v16, %v531_v29 }
 0x1e7   : > { %543 = vst.msk [vmem:[%s280_s16 + $0x30] sm:$0xff] %vm536_vm2, %v532_v30 }
 0x1ec   : > { %v533_v31 = vpop.f32.mrf.mxu2 }
 0x1ed   : > { %v534_v32 = vadd.f32 %v692_v16, %v533_v31 }
 0x1ef   : > { %544 = vst.msk [vmem:[%s280_s16 + $0x38] sm:$0xff] %vm536_vm2, %v534_v32 }
 0x1f0 PF: > { %s17_s24 = sadd.s32 1, %s699_s24  }
 0x1f1   : > { %p14_p4 = scmp.ge.s32.totalorder %s17_s24, 4  }
 0x1f3   :  { %16 = sbr.rel (!%p14_p4) target bundleno = 1 (0x1), region = 78 }

</bundles_post_ra>
